<compile_context>
chip_gen: v7x
topology: tpu7x:2x2x1
jax: 0.10.0
libtpu: 0.0.40
codegen_flags: <defaults>
</compile_context>

<pallas_src>
import functools

import jax
import jax.numpy as jnp
from jax import lax
from jax.experimental import pallas as pl
from jax.experimental.pallas import tpu as pltpu


_LANES = 128
_SUB_ROWS = 64                            # inner-loop sub-slice rows (x128 lanes)
_INPUT_VMEM_BUDGET = 24 * 1024 * 1024     # 2 inputs x 2 pipeline buffers
_ACC_VMEM_BUDGET = 2 * 1024 * 1024        # the two f32 scratch accumulators
_VMEM_LIMIT_BYTES = 48 * 1024 * 1024      # < v7x 64 MiB physical, << v5e/v6e 128 MiB


def _round_up(x, m):
    return ((x + m - 1) // m) * m


def _plan_tiles(r_total, num, itemsize, row_mult):
    """Pick (rows-per-block, rows-per-inner-slice) for the (num, R, 128) layout."""
    # Double-buffered input footprint: 2 inputs x 2 buffers x num x rows x 128.
    cap = _INPUT_VMEM_BUDGET // (4 * num * _LANES * itemsize)
    cap = max(row_mult, (cap // row_mult) * row_mult)
    rows = min(cap, _round_up(r_total, row_mult))
    # Prefer >= 4 pipelined grid steps when there is enough data, so the input
    # DMAs overlap with the VPU accumulation instead of a grid=(1,) bulk load.
    if r_total >= 8 * row_mult:
        rows = min(rows, _round_up(pl.cdiv(r_total, 4), row_mult))
    rows = max(rows, row_mult)

    # Inner sub-slice: bounded so the f32 accumulators stay small, and a
    # divisor of rows so the fori_loop never slices past the block.
    sub_cap = _SUB_ROWS
    while sub_cap > row_mult and 2 * num * sub_cap * _LANES * 4 > _ACC_VMEM_BUDGET:
        sub_cap //= 2
    sub_cap = max(row_mult, sub_cap)
    sub = row_mult
    c = sub_cap
    while c >= row_mult:
        if rows % c == 0:
            sub = c
            break
        c //= 2
    return rows, sub


def _dice_kernel(m1_ref, m2_ref, inter_ref, s12_ref, inter_acc, s12_acc,
                 *, num, r_total, rows, sub):
    k = pl.program_id(0)
    last = pl.num_programs(0) - 1

    @pl.when(k == 0)
    def _():
        inter_acc[...] = jnp.zeros_like(inter_acc)
        s12_acc[...] = jnp.zeros_like(s12_acc)

    n_sub = rows // sub  # static; sub divides rows by construction

    def accumulate(masked):
        def body(i, carry):
            start = pl.multiple_of(i * sub, sub)
            a = m1_ref[:, pl.ds(start, sub), :].astype(jnp.float32)
            b = m2_ref[:, pl.ds(start, sub), :].astype(jnp.float32)
            if masked:
                # Only traced for the ragged last block: zero rows past R so
                # the unspecified out-of-bounds data never reaches the sums.
                row = lax.broadcasted_iota(jnp.int32, (num, sub, _LANES), 1)
                valid = (start + row) < (r_total - k * rows)
                a = jnp.where(valid, a, 0.0)
                b = jnp.where(valid, b, 0.0)
            inter_acc[...] += a * b
            s12_acc[...] += a + b
            return carry
        lax.fori_loop(0, n_sub, body, 0)

    if r_total % rows != 0:
        # Mask only on the last grid step; interior steps stay unmasked.
        @pl.when(k == last)
        def _():
            accumulate(masked=True)

        @pl.when(k != last)
        def _():
            accumulate(masked=False)
    else:
        accumulate(masked=False)

    @pl.when(k == last)
    def _():
        # One-time XLU reductions in the epilogue only.
        inter_lane = jnp.sum(inter_acc[...], axis=1)        # (num, 128)
        s12_lane = jnp.sum(s12_acc[...], axis=1)            # (num, 128)
        inter_ref[...] = jnp.sum(inter_lane, axis=1, keepdims=True)
        s12_ref[...] = jnp.sum(s12_lane, axis=1, keepdims=True)


def dice_loss(logits, targets):
    num = logits.shape[0]
    m1 = jnp.reshape(logits, (num, -1))
    m2 = jnp.reshape(targets, (num, -1))
    d = m1.shape[1]
    d_main = (d // _LANES) * _LANES

    inter = jnp.zeros((num, 1), jnp.float32)
    s12 = jnp.zeros((num, 1), jnp.float32)

    if d_main > 0:
        r_total = d_main // _LANES
        if d_main == d:
            # Free bitcast: contiguous (num, D) -> (num, R, 128).
            m1_main = m1.reshape(num, r_total, _LANES)
            m2_main = m2.reshape(num, r_total, _LANES)
        else:
            # TODO(synk): this slice costs one extra HBM pass when D % 128 != 0;
            # could be avoided with in-kernel lane masking if it ever matters.
            m1_main = m1[:, :d_main].reshape(num, r_total, _LANES)
            m2_main = m2[:, :d_main].reshape(num, r_total, _LANES)

        i1 = jnp.dtype(m1_main.dtype).itemsize
        i2 = jnp.dtype(m2_main.dtype).itemsize
        itemsize = max(i1, i2)
        row_mult = 32 // min(i1, i2)      # sublane multiple: 8 f32 / 16 bf16 / 32 i8
        rows, sub = _plan_tiles(r_total, num, itemsize, row_mult)
        n_chunks = pl.cdiv(r_total, rows)

        kernel = functools.partial(_dice_kernel, num=num, r_total=r_total,
                                   rows=rows, sub=sub)

        inter, s12 = pl.pallas_call(
            kernel,
            out_shape=(jax.ShapeDtypeStruct((num, 1), jnp.float32),
                       jax.ShapeDtypeStruct((num, 1), jnp.float32)),
            grid_spec=pltpu.PrefetchScalarGridSpec(
                num_scalar_prefetch=0,
                grid=(n_chunks,),
                in_specs=[
                    pl.BlockSpec((num, rows, _LANES), lambda k: (0, k, 0)),
                    pl.BlockSpec((num, rows, _LANES), lambda k: (0, k, 0)),
                ],
                out_specs=[
                    pl.BlockSpec((num, 1), lambda k: (0, 0)),
                    pl.BlockSpec((num, 1), lambda k: (0, 0)),
                ],
                scratch_shapes=[
                    pltpu.VMEM((num, sub, _LANES), jnp.float32),
                    pltpu.VMEM((num, sub, _LANES), jnp.float32),
                ],
            ),
            compiler_params=pltpu.CompilerParams(
                dimension_semantics=("arbitrary",),
                vmem_limit_bytes=_VMEM_LIMIT_BYTES,
            ),
            cost_estimate=pl.CostEstimate(
                flops=3 * num * d_main,
                transcendentals=0,
                bytes_accessed=num * d_main * (i1 + i2) + 2 * num * 4,
            ),
        )(m1_main, m2_main)

    if d_main != d:
        # <128-element per-example tail: negligible, plain JAX.
        t1 = m1[:, d_main:].astype(jnp.float32)
        t2 = m2[:, d_main:].astype(jnp.float32)
        inter = inter + jnp.sum(t1 * t2, axis=1, keepdims=True)
        s12 = s12 + jnp.sum(t1 + t2, axis=1, keepdims=True)

    score = (2.0 * inter + 1.0) / (s12 + 1.0)
    return 1.0 - jnp.sum(score) / float(num)


def _reference(logits, targets):
    num = logits.shape[0]
    m1 = logits.reshape(num, -1).astype(jnp.float32)
    m2 = targets.reshape(num, -1).astype(jnp.float32)
    inter = (m1 * m2).sum(1)
    score = (2.0 * inter + 1.0) / (m1.sum(1) + m2.sum(1) + 1.0)
    return 1.0 - score.sum() / num


if __name__ == "__main__":
    key = jax.random.PRNGKey(0)
    k1, k2 = jax.random.split(key)
    # Small shapes consistent with a segmentation-style DiceLoss input.
    logits = jax.random.uniform(k1, (2, 4, 16, 16), dtype=jnp.float32)
    targets = (jax.random.uniform(k2, (2, 4, 16, 16)) > 0.5).astype(jnp.float32)

    loss = dice_loss(logits, targets)
    jax.block_until_ready(loss)

    ref = _reference(logits, targets)
    assert jnp.allclose(loss, ref, atol=1e-5, rtol=1e-5), (loss, ref)
    print("KERNEL_OK")
</pallas_src>

<mosaic_0001>
module attributes {stable_mosaic.version = 11 : i64} {
  func.func @_dice_kernel(%arg0: i32, %arg1: memref<2x8x128xf32, #tpu.memory_space<vmem>>, %arg2: memref<2x8x128xf32, #tpu.memory_space<vmem>>, %arg3: memref<2x1xf32, #tpu.memory_space<vmem>>, %arg4: memref<2x1xf32, #tpu.memory_space<vmem>>, %arg5: memref<2x8x128xf32, #tpu.memory_space<vmem>>, %arg6: memref<2x8x128xf32, #tpu.memory_space<vmem>>) attributes {dimension_semantics = [#tpu.dimension_semantics<arbitrary>], iteration_bounds = array<i64: 1>, scalar_prefetch = 0 : i64, scratch_operands = 2 : i64, tpu.core_type = #tpu.core_type<tc>, window_params = [{transform_indices = @transform_0, window_bounds = array<i64: 2, 8, 128>}, {transform_indices = @transform_1, window_bounds = array<i64: 2, 8, 128>}, {pipeline_mode = #tpu.pipeline_mode<synchronous>, transform_indices = @transform_2, window_bounds = array<i64: 2, 1>}, {pipeline_mode = #tpu.pipeline_mode<synchronous>, transform_indices = @transform_3, window_bounds = array<i64: 2, 1>}]} {
    %c0_i32 = arith.constant 0 : i32
    %0 = arith.cmpi eq, %arg0, %c0_i32 : i32
    %1 = arith.extui %0 : i1 to i32
    %c0_i32_0 = arith.constant 0 : i32
    %2 = arith.cmpi ne, %1, %c0_i32_0 : i32
    scf.if %2 {
      %cst = arith.constant 0.000000e+00 : f32
      %20 = vector.broadcast %cst : f32 to vector<2x8x128xf32>
      %c0_19 = arith.constant 0 : index
      %c0_20 = arith.constant 0 : index
      %c0_21 = arith.constant 0 : index
      %21 = vector.load %arg5[%c0_19, %c0_20, %c0_21] : memref<2x8x128xf32, #tpu.memory_space<vmem>>, vector<2x8x128xf32>
      tpu.vector_store %arg5[%c0_19, %c0_20, %c0_21], %20 {strides = array<i32>} : memref<2x8x128xf32, #tpu.memory_space<vmem>>, vector<2x8x128xf32>,
      %cst_22 = arith.constant 0.000000e+00 : f32
      %22 = vector.broadcast %cst_22 : f32 to vector<2x8x128xf32>
      %c0_23 = arith.constant 0 : index
      %c0_24 = arith.constant 0 : index
      %c0_25 = arith.constant 0 : index
      %23 = vector.load %arg6[%c0_23, %c0_24, %c0_25] : memref<2x8x128xf32, #tpu.memory_space<vmem>>, vector<2x8x128xf32>
      tpu.vector_store %arg6[%c0_23, %c0_24, %c0_25], %22 {strides = array<i32>} : memref<2x8x128xf32, #tpu.memory_space<vmem>>, vector<2x8x128xf32>,
    } else {
    }
    %c0_i32_1 = arith.constant 0 : i32
    %c8_i32 = arith.constant 8 : i32
    %3 = arith.muli %c0_i32_1, %c8_i32 : i32
    %4 = tpu.assume_multiple %3, 8 : i32
    %c0 = arith.constant 0 : index
    %5 = arith.index_cast %4 : i32 to index
    %c0_2 = arith.constant 0 : index
    %6 = vector.load %arg1[%c0, %5, %c0_2] : memref<2x8x128xf32, #tpu.memory_space<vmem>>, vector<2x8x128xf32>
    %c0_3 = arith.constant 0 : index
    %7 = arith.index_cast %4 : i32 to index
    %c0_4 = arith.constant 0 : index
    %8 = vector.load %arg2[%c0_3, %7, %c0_4] : memref<2x8x128xf32, #tpu.memory_space<vmem>>, vector<2x8x128xf32>
    %c0_5 = arith.constant 0 : index
    %c0_6 = arith.constant 0 : index
    %c0_7 = arith.constant 0 : index
    %9 = vector.load %arg5[%c0_5, %c0_6, %c0_7] : memref<2x8x128xf32, #tpu.memory_space<vmem>>, vector<2x8x128xf32>
    %10 = arith.mulf %6, %8 : vector<2x8x128xf32>
    %11 = arith.addf %9, %10 : vector<2x8x128xf32>
    %c0_8 = arith.constant 0 : index
    %c0_9 = arith.constant 0 : index
    %c0_10 = arith.constant 0 : index
    %12 = vector.load %arg5[%c0_8, %c0_9, %c0_10] : memref<2x8x128xf32, #tpu.memory_space<vmem>>, vector<2x8x128xf32>
    tpu.vector_store %arg5[%c0_8, %c0_9, %c0_10], %11 {strides = array<i32>} : memref<2x8x128xf32, #tpu.memory_space<vmem>>, vector<2x8x128xf32>,
    %c0_11 = arith.constant 0 : index
    %c0_12 = arith.constant 0 : index
    %c0_13 = arith.constant 0 : index
    %13 = vector.load %arg6[%c0_11, %c0_12, %c0_13] : memref<2x8x128xf32, #tpu.memory_space<vmem>>, vector<2x8x128xf32>
    %14 = arith.addf %6, %8 : vector<2x8x128xf32>
    %15 = arith.addf %13, %14 : vector<2x8x128xf32>
    %c0_14 = arith.constant 0 : index
    %c0_15 = arith.constant 0 : index
    %c0_16 = arith.constant 0 : index
    %16 = vector.load %arg6[%c0_14, %c0_15, %c0_16] : memref<2x8x128xf32, #tpu.memory_space<vmem>>, vector<2x8x128xf32>
    tpu.vector_store %arg6[%c0_14, %c0_15, %c0_16], %15 {strides = array<i32>} : memref<2x8x128xf32, #tpu.memory_space<vmem>>, vector<2x8x128xf32>,
    %c1_i32 = arith.constant 1 : i32
    %c0_i32_17 = arith.constant 0 : i32
    %17 = arith.cmpi eq, %arg0, %c0_i32_17 : i32
    %18 = arith.extui %17 : i1 to i32
    %c0_i32_18 = arith.constant 0 : i32
    %19 = arith.cmpi ne, %18, %c0_i32_18 : i32
    scf.if %19 {
      %c0_19 = arith.constant 0 : index
      %c0_20 = arith.constant 0 : index
      %c0_21 = arith.constant 0 : index
      %20 = vector.load %arg5[%c0_19, %c0_20, %c0_21] : memref<2x8x128xf32, #tpu.memory_space<vmem>>, vector<2x8x128xf32>
      %cst = arith.constant dense<0.000000e+00> : vector<2x128xf32>
      %21 = vector.multi_reduction <add>, %20, %cst [1] : vector<2x8x128xf32> to vector<2x128xf32>
      %c0_22 = arith.constant 0 : index
      %c0_23 = arith.constant 0 : index
      %c0_24 = arith.constant 0 : index
      %22 = vector.load %arg6[%c0_22, %c0_23, %c0_24] : memref<2x8x128xf32, #tpu.memory_space<vmem>>, vector<2x8x128xf32>
      %cst_25 = arith.constant dense<0.000000e+00> : vector<2x128xf32>
      %23 = vector.multi_reduction <add>, %22, %cst_25 [1] : vector<2x8x128xf32> to vector<2x128xf32>
      %cst_26 = arith.constant dense<0.000000e+00> : vector<2xf32>
      %24 = vector.multi_reduction <add>, %21, %cst_26 [1] : vector<2x128xf32> to vector<2xf32>
      %25 = vector.shape_cast %24 : vector<2xf32> to vector<2x1xf32>
      %c0_27 = arith.constant 0 : index
      %c0_28 = arith.constant 0 : index
      %26 = vector.load %arg3[%c0_27, %c0_28] : memref<2x1xf32, #tpu.memory_space<vmem>>, vector<2x1xf32>
      tpu.vector_store %arg3[%c0_27, %c0_28], %25 {strides = array<i32>} : memref<2x1xf32, #tpu.memory_space<vmem>>, vector<2x1xf32>,
      %cst_29 = arith.constant dense<0.000000e+00> : vector<2xf32>
      %27 = vector.multi_reduction <add>, %23, %cst_29 [1] : vector<2x128xf32> to vector<2xf32>
      %28 = vector.shape_cast %27 : vector<2xf32> to vector<2x1xf32>
      %c0_30 = arith.constant 0 : index
      %c0_31 = arith.constant 0 : index
      %29 = vector.load %arg4[%c0_30, %c0_31] : memref<2x1xf32, #tpu.memory_space<vmem>>, vector<2x1xf32>
      tpu.vector_store %arg4[%c0_30, %c0_31], %28 {strides = array<i32>} : memref<2x1xf32, #tpu.memory_space<vmem>>, vector<2x1xf32>,
    } else {
    }
    return
  }
  func.func @transform_0(%arg0: i32) -> (i32, i32, i32) {
    %c0_i32 = arith.constant 0 : i32
    %c0_i32_0 = arith.constant 0 : i32
    %c0_i32_1 = arith.constant 0 : i32
    return %c0_i32, %arg0, %c0_i32_0 : i32, i32, i32
  }
  func.func @transform_1(%arg0: i32) -> (i32, i32, i32) {
    %c0_i32 = arith.constant 0 : i32
    %c0_i32_0 = arith.constant 0 : i32
    %c0_i32_1 = arith.constant 0 : i32
    return %c0_i32, %arg0, %c0_i32_0 : i32, i32, i32
  }
  func.func @transform_2(%arg0: i32) -> (i32, i32) {
    %c0_i32 = arith.constant 0 : i32
    %c0_i32_0 = arith.constant 0 : i32
    %c0_i32_1 = arith.constant 0 : i32
    return %c0_i32, %c0_i32_0 : i32, i32
  }
  func.func @transform_3(%arg0: i32) -> (i32, i32) {
    %c0_i32 = arith.constant 0 : i32
    %c0_i32_0 = arith.constant 0 : i32
    %c0_i32_1 = arith.constant 0 : i32
    return %c0_i32, %c0_i32_0 : i32, i32
  }
}

</mosaic_0001>

<bundles_post_ra>
// kernel: tpu_custom_call.1
= control target key start
LH: loop header
LB: loop body
LE: loop exit
PB: predicated region body
PF: predicated region fallthrough
CT: control target
= control target key end

     0   :  { %9 = vsyncpa [#allocation5], 0  ;;  %s235_s0 = inlined_call_operand.hbm [shape: f32[2,8,128], index: 0, kind: input, shape index: {}]   ;;  %s236_s1 = inlined_call_operand.hbm [shape: f32[2,8,128], index: 1, kind: input, shape index: {}]   ;;  %s237_s2 = inlined_call_operand.vmem [shape: f32[2,1], index: 2, kind: output, shape index: {0}]   ;;  %s238_s3 = inlined_call_operand.vmem [shape: f32[2,1], index: 3, kind: output, shape index: {1}]  }
   0x1   :  { %10 = vsyncpa [#allocation7], 0  ;;  %s181_s12 = smov [#allocation4]   ;;  %s133_s16 = scalar_lea.hbm %s235_s0, 256 }
   0x2   :  { %s16_s13 = sshll.u32 %s181_s12, 4  ;;  %p134_p0 = scmp.ne.s32.totalorder %s235_s0, %s133_s16  ;;  %s17_s13 = int_to_ptr.vmem [resolvable:$true] %s16_s13 }
   0x3   :  { %p137_p1 = scmp.lt.u32.totalorder %s133_s16, %s235_s0 }
   0x5   :  { %p139_p2 = pnand %p137_p1, %p134_p0 }
   0x7   :  { %142 = shalt.err (!%p139_p2)
}
   0x8   :  { %s143_s21 = scalar_lea.vmem %s17_s13, 256  ;;  %p148_p4 = scmp.lt.s32.totalorder %s17_s13, %s17_s13 }
   0x9   :  { %p144_p3 = scmp.ne.s32.totalorder %s17_s13, %s143_s21  ;;  %p149_p5 = scmp.lt.s32.totalorder %s143_s21, %s143_s21 }
   0xb   :  { %p150_p6 = por %p149_p5, %p148_p4 }
   0xd   :  { %p151_p7 = pnand %p150_p6, %p144_p3 }
   0xf   :  { %154 = shalt.err (!%p151_p7)
}
  0x10   :  { %s182_s22 = smov 128   ;;  %s183_s23 = smov 8  }
  0x11   :  { %22 = dma.hbm_to_vmem [thread:$0]  %s235_s0, 256, %s17_s13, [#allocation5], %s182_s22, %s182_s22, %s183_s23  }
  0x12   :  { %s184_s26 = smov [#allocation6]   ;;  %s155_s30 = scalar_lea.hbm %s236_s1, 256 }
  0x13   :  { %s28_s27 = sshll.u32 %s184_s26, 4  ;;  %p156_p8 = scmp.ne.s32.totalorder %s236_s1, %s155_s30  ;;  %s29_s27 = int_to_ptr.vmem [resolvable:$true] %s28_s27 }
  0x14   :  { %p159_p9 = scmp.lt.u32.totalorder %s155_s30, %s236_s1 }
  0x16   :  { %p161_p10 = pnand %p159_p9, %p156_p8 }
  0x18   :  { %164 = shalt.err (!%p161_p10)
}
  0x19   :  { %s165_s8 = scalar_lea.vmem %s29_s27, 256  ;;  %p170_p12 = scmp.lt.s32.totalorder %s29_s27, %s29_s27 }
  0x1a   :  { %p166_p11 = scmp.ne.s32.totalorder %s29_s27, %s165_s8  ;;  %p171_p13 = scmp.lt.s32.totalorder %s165_s8, %s165_s8 }
  0x1c   :  { %p172_p0 = por %p171_p13, %p170_p12 }
  0x1e   :  { %p173_p1 = pnand %p172_p0, %p166_p11 }
  0x20   :  { %176 = shalt.err (!%p173_p1)
}
  0x21   :  { %34 = dma.hbm_to_vmem [thread:$0]  %s236_s1, 256, %s29_s27, [#allocation7], %s182_s22, %s182_s22, %s183_s23  }
  0x22   :  { %177 = dma.done.wait [#allocation5], 256  }
  0x23   :  { %178 = vsyncadd [#allocation5], 4294967040 }
  0x24   :  { %179 = dma.done.wait [#allocation7], 256  }
  0x25   :  { %180 = vsyncadd [#allocation7], 4294967040  ;;  %v49_v0 = vld [vmem:[#allocation4] sm:$0xff]  ;;  %v50_v1 = vld [vmem:[#allocation4 + $0x8] sm:$0xff]  ;;  %vm102_vm0 = vcmask 1041409   ;;  %vm105_vm1 = vcmask 1041408  }
  0x26   :  { %v51_v2 = vld [vmem:[#allocation6] sm:$0xff]  ;;  %v52_v3 = vld [vmem:[#allocation6 + $0x8] sm:$0xff]  ;;  %vm109_vm2 = vcmask 1024  }
  0x27   :  { %v55_v4 = vmul.f32 %v51_v2, %v49_v0  ;;  %v63_v5 = vadd.f32 %v51_v2, %v49_v0  ;;  %v56_v6 = vmul.f32 %v52_v3, %v50_v1  ;;  %v64_v7 = vadd.f32 %v52_v3, %v50_v1 }
  0x29   :  { %v74_v8 = vrot.slane %v55_v4, 4  ;;  %v88_v9 = vrot.slane %v63_v5, 4  ;;  %v80_v10 = vrot.slane %v56_v6, 4  ;;  %v94_v11 = vrot.slane %v64_v7, 4 }
  0x2b   :  { %v75_v12 = vadd.f32 %v74_v8, %v55_v4  ;;  %v89_v13 = vadd.f32 %v88_v9, %v63_v5  ;;  %v81_v14 = vadd.f32 %v80_v10, %v56_v6  ;;  %v95_v15 = vadd.f32 %v94_v11, %v64_v7 }
  0x2d   :  { %v76_v16 = vrot.slane %v75_v12, 2  ;;  %v90_v17 = vrot.slane %v89_v13, 2  ;;  %v82_v18 = vrot.slane %v81_v14, 2  ;;  %v96_v19 = vrot.slane %v95_v15, 2 }
  0x2f   :  { %v77_v20 = vadd.f32 %v76_v16, %v75_v12  ;;  %v91_v21 = vadd.f32 %v90_v17, %v89_v13  ;;  %v83_v22 = vadd.f32 %v82_v18, %v81_v14  ;;  %v97_v23 = vadd.f32 %v96_v19, %v95_v15 }
  0x31   :  { %v78_v24 = vrot.slane %v77_v20, 1  ;;  %v92_v25 = vrot.slane %v91_v21, 1  ;;  %v84_v26 = vrot.slane %v83_v22, 1  ;;  %v98_v27 = vrot.slane %v97_v23, 1 }
  0x33   :  { %v79_v28 = vadd.f32 %v78_v24, %v77_v20  ;;  %v93_v29 = vadd.f32 %v92_v25, %v91_v21  ;;  %v85_v30 = vadd.f32 %v84_v26, %v83_v22  ;;  %v99_v31 = vadd.f32 %v98_v27, %v97_v23 }
  0x35   :  { %v103_v32 = vsel %vm102_vm0, %v85_v30, %v79_v28  ;;  %v113_v33 = vsel %vm102_vm0, %v99_v31, %v93_v29 }
  0x36   :  { %v106_v34 = vsel %vm105_vm1, %v103_v32, 0.0  ;;  %v115_v35 = vsel %vm105_vm1, %v113_v33, 0.0 }
  0x37   :  { %107 = vadd.xlane.f32.xlu0 %v106_v34 }
  0x3b   :  { %116 = vadd.xlane.f32.xlu0 %v115_v35 }
  0xc4   :  { %v108_v36 = vpop.xlane.xlu0 %107 }
  0xc5   :  { %110 = vst.msk [vmem:[%s237_s2] sm:$0x3] %vm109_vm2, %v108_v36 }
  0xc8   :  { %v117_v37 = vpop.xlane.xlu0 %116 }
  0xc9   :  { %118 = vst.msk [vmem:[%s238_s3] sm:$0x3] %vm109_vm2, %v117_v37 }
  0xca   :  { %127 = vsyncpa [#allocation5], 1 }
  0xcb   :  { %128 = vsyncpa [#allocation7], 1 }

</bundles_post_ra>
